<compile_context>
chip_gen: v7x
topology: tpu7x:2x2x1
jax: 0.10.0
libtpu: 0.0.40
codegen_flags: <defaults>
</compile_context>

<pallas_src>
import functools
import math

import numpy as np
import jax
import jax.numpy as jnp
from jax.experimental import pallas as pl
from jax.experimental.pallas import tpu as pltpu


def _deconv_kernel(x_ref, w_ref, o_ref, *, th, w_dim, kc, ek, cols_pad):
    """One (batch n, row-tile h) grid step.

    x_ref : (TH+ek-1, W, ek*Cin)     bf16 halo'd row window, column taps pre-unrolled
    w_ref : (ek, ek*Cin, cols_pad)   bf16 parity-folded weights, row-tap major
    o_ref : (TH*W, cols_pad)         bf16 output tile (lane-dense last dim)
    """
    acc = jnp.zeros((th * w_dim, cols_pad), jnp.float32)
    for dr in range(ek):                      # ek accumulating MXU matmuls
        # Major-dim static slice: no lane/sublane movement, stays bf16.
        xr = x_ref[dr:dr + th]                # (TH, W, ek*Cin)
        xr = xr.reshape(th * w_dim, kc)       # W == one sublane tile -> cheap merge
        acc = acc + jnp.dot(xr, w_ref[dr], preferred_element_type=jnp.float32)
    o_ref[...] = acc.astype(o_ref.dtype)


def _fold_weights(weight_oihw, kernel_size, scale):
    """Fold nearest-upsample(x scale) + conv(k, pad=(k-1)//2) into per-output-parity
    taps over the ORIGINAL grid.

    Returns (w3, ek, pad_lo, pad_hi) with
      w3[dr, dc*Cin + i, (c*scale + py)*scale + px]
        = sum of original taps w[c, i, a, b] that read source offset (dr, dc)
          for output parity (py, px).
    Column order (c, py, px) already matches the depth-to-space epilogue.
    """
    cout, cin, k, _ = weight_oihw.shape
    p = (kernel_size - 1) // 2
    dmin = (-p) // scale
    dmax = (scale - 1 + k - 1 - p) // scale
    ek = dmax - dmin + 1
    S = np.zeros((scale, k, ek), np.float32)        # S[parity, tap, folded-offset]
    for r in range(scale):
        for a in range(k):
            S[r, a, (r + a - p) // scale - dmin] = 1.0
    S = jnp.asarray(S)
    w_eff = jnp.einsum('ciab,pad,qbe->deicpq', weight_oihw.astype(jnp.float32), S, S)
    w3 = w_eff.reshape(ek, ek * cin, cout * scale * scale)
    return w3, ek, -dmin, dmax


def _pick_row_tile(H, W, target_pixels):
    """Row tile TH so TH*W ~= target_pixels and the out block is sublane-aligned."""
    th = max(1, min(H, target_pixels // max(W, 1)))
    while (th * W) % 8 != 0 and th < H:
        th += 1
    return th


def deconv_forward(x_nchw, weight_oihw, *, kernel_size=3, upsample_scale=2,
                   compute_dtype=jnp.bfloat16, target_tile_pixels=1024):
    """Equivalent of DeConv.forward: UpsamplingNearest2d(scale) -> Conv2d(k, pad, no bias).

    Matmuls run with bf16 inputs and f32 accumulation (bf16-level accuracy).
    """
    if kernel_size % 2 != 1:
        raise ValueError("pad=(k-1)//2 only gives 'same' geometry for odd kernel_size")
    N, Cin, H, W = x_nchw.shape
    Cout = weight_oihw.shape[0]
    s = upsample_scale
    out_dtype = x_nchw.dtype

    # Parity-folded weights (fused upsample).  Pad output columns to a multiple of
    # 128 so kernel stores are unmasked full-lane stores (no-op when Cout*s*s >= 128
    # and already aligned, which is the realistic case).
    w3, ek, pad_lo, pad_hi = _fold_weights(weight_oihw, kernel_size, s)
    halo = ek - 1
    kc = ek * Cin
    C_cols = Cout * s * s
    cols_pad = ((C_cols + 127) // 128) * 128
    w3 = jnp.pad(w3, ((0, 0), (0, 0), (0, cols_pad - C_cols))).astype(compute_dtype)

    TH = _pick_row_tile(H, W, target_tile_pixels)
    n_ht = -(-H // TH)                  # cdiv; ragged H handled by row padding
    H_pad = n_ht * TH

    # NCHW -> NHWC bf16, halo pad (+ ragged-row pad), pre-unroll column taps,
    # then stack the overlapping (TH+halo)-row windows so the BlockSpec pipeline
    # can double-buffer the input DMA.  No upsampled intermediate ever hits HBM;
    # the staged input is only ~ek * (TH+halo)/TH x the input bytes.
    x = jnp.transpose(x_nchw, (0, 2, 3, 1)).astype(compute_dtype)
    x = jnp.pad(x, ((0, 0), (pad_lo, pad_hi + (H_pad - H)), (pad_lo, pad_hi), (0, 0)))
    x_cols = jnp.concatenate([x[:, :, dc:dc + W, :] for dc in range(ek)], axis=-1)
    x_win = jnp.stack([x_cols[:, t * TH: t * TH + TH + halo] for t in range(n_ht)],
                      axis=1)            # (N, n_ht, TH+halo, W, ek*Cin)

    kernel = functools.partial(_deconv_kernel, th=TH, w_dim=W, kc=kc, ek=ek,
                               cols_out=None) if False else functools.partial(
        _deconv_kernel, th=TH, w_dim=W, kc=kc, ek=ek, cols_pad=cols_pad)

    out_flat = pl.pallas_call(
        kernel,
        out_shape=jax.ShapeDtypeStruct((N, H_pad * W, cols_pad), compute_dtype),
        grid=(N, n_ht),
        in_specs=[
            # Halo'd input row window (auto double-buffered by the pipeline).
            pl.BlockSpec((None, None, TH + halo, W, kc),
                         lambda n, h: (n, h, 0, 0, 0)),
            # Resident folded weights (constant index map).
            pl.BlockSpec((ek, kc, cols_pad), lambda n, h: (0, 0, 0)),
        ],
        out_specs=pl.BlockSpec((None, TH * W, cols_pad), lambda n, h: (n, h, 0)),
        compiler_params=pltpu.CompilerParams(
            dimension_semantics=("parallel", "parallel"),
            vmem_limit_bytes=32 * 1024 * 1024),
    )(x_win, w3)

    # Fused epilogue: drop lane padding, depth->space, NHWC->NCHW, cast back.
    out = out_flat[..., :C_cols].reshape(N, H_pad, W, Cout, s, s)[:, :H]
    out = jnp.transpose(out, (0, 3, 1, 4, 2, 5)).reshape(N, Cout, H * s, W * s)
    return out.astype(out_dtype)


def xavier_uniform_conv_weight(key, out_c, in_c, kh, kw, dtype=jnp.float32):
    """Matches torch.nn.init.xavier_uniform_ for a Conv2d weight (OIHW)."""
    fan_in = in_c * kh * kw
    fan_out = out_c * kh * kw
    bound = math.sqrt(6.0 / (fan_in + fan_out))
    return jax.random.uniform(key, (out_c, in_c, kh, kw), dtype,
                              minval=-bound, maxval=bound)


if __name__ == "__main__":
    key = jax.random.PRNGKey(0)
    k_x, k_w = jax.random.split(key)

    N, Cin, H, W = 2, 4, 16, 16
    Cout, KSIZE, SCALE = 8, 3, 2

    x = jax.random.normal(k_x, (N, Cin, H, W), jnp.float32)
    weight = xavier_uniform_conv_weight(k_w, Cout, Cin, KSIZE, KSIZE)

    fwd = jax.jit(functools.partial(deconv_forward,
                                    kernel_size=KSIZE, upsample_scale=SCALE))
    out = jax.block_until_ready(fwd(x, weight))

    # Reference: plain XLA nearest-upsample + f32 conv.
    x_up = jnp.repeat(jnp.repeat(x, SCALE, axis=2), SCALE, axis=3)
    pad = (KSIZE - 1) // 2
    ref = jax.lax.conv_general_dilated(
        x_up, weight, window_strides=(1, 1),
        padding=((pad, pad), (pad, pad)),
        dimension_numbers=("NCHW", "OIHW", "NCHW"),
        precision=jax.lax.Precision.HIGHEST)

    assert out.shape == (N, Cout, H * SCALE, W * SCALE), out.shape
    max_err = float(jnp.max(jnp.abs(out - ref)))
    # bf16 matmul inputs / bf16 kernel output with f32 accumulation.
    assert jnp.allclose(out, ref, atol=5e-2, rtol=5e-2), max_err
    print("KERNEL_OK")
</pallas_src>

<mosaic_0001>
module attributes {stable_mosaic.version = 11 : i64} {
  func.func @_deconv_kernel(%arg0: i32, %arg1: i32, %arg2: memref<1x1x18x16x12xbf16, #tpu.memory_space<vmem>>, %arg3: memref<3x12x128xbf16, #tpu.memory_space<vmem>>, %arg4: memref<1x256x128xbf16, #tpu.memory_space<vmem>>) attributes {dimension_semantics = [#tpu.dimension_semantics<parallel>, #tpu.dimension_semantics<parallel>], iteration_bounds = array<i64: 2, 1>, scalar_prefetch = 0 : i64, scratch_operands = 0 : i64, tpu.core_type = #tpu.core_type<tc>, window_params = [{transform_indices = @transform_0, window_bounds = array<i64: 1, 1, 18, 16, 12>}, {pipeline_mode = #tpu.pipeline_mode<synchronous>, transform_indices = @transform_1, window_bounds = array<i64: 3, 12, 128>}, {transform_indices = @transform_2, window_bounds = array<i64: 1, 256, 128>}]} {
    %cst = arith.constant 0.000000e+00 : f32
    %0 = vector.broadcast %cst : f32 to vector<256x128xf32>
    %c0 = arith.constant 0 : index
    %c0_0 = arith.constant 0 : index
    %c0_1 = arith.constant 0 : index
    %c0_2 = arith.constant 0 : index
    %c0_3 = arith.constant 0 : index
    %1 = vector.load %arg2[%c0, %c0_0, %c0_1, %c0_2, %c0_3] : memref<1x1x18x16x12xbf16, #tpu.memory_space<vmem>>, vector<1x1x16x16x12xbf16>
    %2 = vector.shape_cast %1 : vector<1x1x16x16x12xbf16> to vector<16x16x12xbf16>
    %3 = vector.shape_cast %2 : vector<16x16x12xbf16> to vector<256x12xbf16>
    %c0_4 = arith.constant 0 : index
    %c0_5 = arith.constant 0 : index
    %c0_6 = arith.constant 0 : index
    %4 = vector.load %arg3[%c0_4, %c0_5, %c0_6] : memref<3x12x128xbf16, #tpu.memory_space<vmem>>, vector<1x12x128xbf16>
    %5 = vector.shape_cast %4 : vector<1x12x128xbf16> to vector<12x128xbf16>
    %cst_7 = arith.constant dense<0.000000e+00> : vector<256x128xf32>
    %6 = tpu.matmul %3, %5, %cst_7 {dimension_numbers = #tpu.dot_dimension_numbers<[1], [0], [0], [1], [0, 0, 1, 1], [], []>} : vector<256x12xbf16>, vector<12x128xbf16>, vector<256x128xf32> -> vector<256x128xf32>
    %7 = arith.addf %0, %6 : vector<256x128xf32>
    %c0_8 = arith.constant 0 : index
    %c0_9 = arith.constant 0 : index
    %c1 = arith.constant 1 : index
    %c0_10 = arith.constant 0 : index
    %c0_11 = arith.constant 0 : index
    %8 = vector.load %arg2[%c0_8, %c0_9, %c1, %c0_10, %c0_11] : memref<1x1x18x16x12xbf16, #tpu.memory_space<vmem>>, vector<1x1x16x16x12xbf16>
    %9 = vector.shape_cast %8 : vector<1x1x16x16x12xbf16> to vector<16x16x12xbf16>
    %10 = vector.shape_cast %9 : vector<16x16x12xbf16> to vector<256x12xbf16>
    %c1_12 = arith.constant 1 : index
    %c0_13 = arith.constant 0 : index
    %c0_14 = arith.constant 0 : index
    %11 = vector.load %arg3[%c1_12, %c0_13, %c0_14] : memref<3x12x128xbf16, #tpu.memory_space<vmem>>, vector<1x12x128xbf16>
    %12 = vector.shape_cast %11 : vector<1x12x128xbf16> to vector<12x128xbf16>
    %cst_15 = arith.constant dense<0.000000e+00> : vector<256x128xf32>
    %13 = tpu.matmul %10, %12, %cst_15 {dimension_numbers = #tpu.dot_dimension_numbers<[1], [0], [0], [1], [0, 0, 1, 1], [], []>} : vector<256x12xbf16>, vector<12x128xbf16>, vector<256x128xf32> -> vector<256x128xf32>
    %14 = arith.addf %7, %13 : vector<256x128xf32>
    %c0_16 = arith.constant 0 : index
    %c0_17 = arith.constant 0 : index
    %c2 = arith.constant 2 : index
    %c0_18 = arith.constant 0 : index
    %c0_19 = arith.constant 0 : index
    %15 = vector.load %arg2[%c0_16, %c0_17, %c2, %c0_18, %c0_19] : memref<1x1x18x16x12xbf16, #tpu.memory_space<vmem>>, vector<1x1x16x16x12xbf16>
    %16 = vector.shape_cast %15 : vector<1x1x16x16x12xbf16> to vector<16x16x12xbf16>
    %17 = vector.shape_cast %16 : vector<16x16x12xbf16> to vector<256x12xbf16>
    %c2_20 = arith.constant 2 : index
    %c0_21 = arith.constant 0 : index
    %c0_22 = arith.constant 0 : index
    %18 = vector.load %arg3[%c2_20, %c0_21, %c0_22] : memref<3x12x128xbf16, #tpu.memory_space<vmem>>, vector<1x12x128xbf16>
    %19 = vector.shape_cast %18 : vector<1x12x128xbf16> to vector<12x128xbf16>
    %cst_23 = arith.constant dense<0.000000e+00> : vector<256x128xf32>
    %20 = tpu.matmul %17, %19, %cst_23 {dimension_numbers = #tpu.dot_dimension_numbers<[1], [0], [0], [1], [0, 0, 1, 1], [], []>} : vector<256x12xbf16>, vector<12x128xbf16>, vector<256x128xf32> -> vector<256x128xf32>
    %21 = arith.addf %14, %20 : vector<256x128xf32>
    %22 = arith.truncf %21 : vector<256x128xf32> to vector<256x128xbf16>
    %c0_24 = arith.constant 0 : index
    %c0_25 = arith.constant 0 : index
    %c0_26 = arith.constant 0 : index
    %23 = vector.load %arg4[%c0_24, %c0_25, %c0_26] : memref<1x256x128xbf16, #tpu.memory_space<vmem>>, vector<1x256x128xbf16>
    %24 = vector.shape_cast %23 : vector<1x256x128xbf16> to vector<256x128xbf16>
    %25 = vector.shape_cast %22 : vector<256x128xbf16> to vector<1x256x128xbf16>
    tpu.vector_store %arg4[%c0_24, %c0_25, %c0_26], %25 {strides = array<i32>} : memref<1x256x128xbf16, #tpu.memory_space<vmem>>, vector<1x256x128xbf16>,
    return
  }
  func.func @transform_0(%arg0: i32, %arg1: i32) -> (i32, i32, i32, i32, i32) {
    %c0_i32 = arith.constant 0 : i32
    %c0_i32_0 = arith.constant 0 : i32
    %c0_i32_1 = arith.constant 0 : i32
    %c0_i32_2 = arith.constant 0 : i32
    return %arg0, %arg1, %c0_i32, %c0_i32_0, %c0_i32_1 : i32, i32, i32, i32, i32
  }
  func.func @transform_1(%arg0: i32, %arg1: i32) -> (i32, i32, i32) {
    %c0_i32 = arith.constant 0 : i32
    %c0_i32_0 = arith.constant 0 : i32
    %c0_i32_1 = arith.constant 0 : i32
    %c0_i32_2 = arith.constant 0 : i32
    return %c0_i32, %c0_i32_0, %c0_i32_1 : i32, i32, i32
  }
  func.func @transform_2(%arg0: i32, %arg1: i32) -> (i32, i32, i32) {
    %c0_i32 = arith.constant 0 : i32
    %c0_i32_0 = arith.constant 0 : i32
    return %arg0, %arg1, %c0_i32 : i32, i32, i32
  }
}

</mosaic_0001>

<bundles_post_ra>
// kernel: deconv_forward.1
= control target key start
LH: loop header
LB: loop body
LE: loop exit
PB: predicated region body
PF: predicated region fallthrough
CT: control target
= control target key end

     0   :  { %s2138_s9 = smov 0   ;;  %s2140_s10 = smov 0   ;;  %s2307_s0 = inlined_call_operand.vmem [shape: bf16[2,1,18,16,12], index: 0, kind: input, shape index: {}]   ;;  %s2308_s1 = inlined_call_operand.vmem [shape: bf16[3,12,128], index: 1, kind: input, shape index: {}]   ;;  %s2309_s2 = inlined_call_operand.vmem [shape: bf16[2,256,128], index: 2, kind: output, shape index: {}]  }
   0x1   :  { %s2142_s11 = smov 0  }
   0x2 LB: > { %s24_s12 = sadd.s32 1, %s2117_s10  ;;  %p1467_p0 = scmp.ge.s32.totalorder %s2121_s11, 1  ;;  %s2121_s11 = sphi %s2142_s11, %s12_s11   ;;  %s2117_s10 = sphi %s2140_s10, %s2311_s10   ;;  %s2113_s9 = sphi %s2138_s9, %s2310_s9  }
   0x3   : > { %p26_p1 = scmp.ge.s32.totalorder %s24_s12, 2  ;;  %p132_p2 = scmp.lt.s32.totalorder %s2121_s11, 3 }
   0x5   : > { %s2313_s12 = smov (%p26_p1, %s24_s12), 0  ;;  %p133_p3 = pnand %p1467_p0, %p132_p2 }
   0x6   : > { %v2048_v0 = vld [vmem:[%s2308_s1 + $0x8] sm:$0x3f] (!%p133_p3)   ;;  %vm386_vm0 = vcmask (!%p133_p3), 1045504   ;;  %p162_p4 = scmp.lt.s32.totalorder (!%p133_p3), %s2113_s9, 1  ;;  %v2049_v1 = vld [vmem:[%s2308_s1] sm:$0x3f] (!%p133_p3)  }
   0x7   : > { %136 = sbr.rel (%p133_p3) target bundleno = 328 (0x148), region = 28  ;;  %2019 = vmatprep.subr.msk.bf16.mxu1 (!%p133_p3), %vm386_vm0, %v2048_v0  ;;  %v388_v2 = vsel (!%p133_p3), %vm386_vm0, %v2048_v0, 0  ;;  %v2052_v3 = vld [vmem:[%s2308_s1 + $0x10] sm:$0x3f] (!%p133_p3)   ;;  %2020 = vmatprep.subr.msk.bf16.mxu0 (!%p133_p3), %vm386_vm0, %v2049_v1  ;;  %v685_v4 = vsel (!%p133_p3), %vm386_vm0, %v2049_v1, 0  ;;  %vm337_vm1 = vcmask (!%p133_p3), 97280  }
   0x8   : > { %1852 = vmatpush3.bf16.msra.mxu1 (!%p133_p3), %v388_v2  ;;  %1886 = vmatpush3.bf16.msra.mxu0 (!%p133_p3), %v685_v4  ;;  %v1018_v9 = vsel (!%p133_p3), %vm386_vm0, %v2052_v3, 0 }
   0x9   : > { %2021 = vmatprep.subr.msk.bf16.mxu1 (!%p133_p3), %vm386_vm0, %v2049_v1  ;;  %2022 = vmatprep.subr.msk.bf16.mxu0 (!%p133_p3), %vm386_vm0, %v2052_v3 }
   0xe   : > { %s2315_s9 = smov (!%p162_p4, %s2113_s9), 1 }
   0xf   : > { %s2023_s19 = smul.u32 144, %s2315_s9  ;;  %s1672_s23 = sshll.u32 %s2315_s9, 7 }
  0x10   : > { %s2280_s26 = scalar_lea.vmem %s2309_s2, %s1672_s23 }
  0x11   : > { %s2177_s22 = scalar_lea.vmem %s2307_s0, %s2023_s19 }
  0x12   : > { %v2050_v5 = vld [vmem:[%s2177_s22 + $0x8] sm:$0xff]   ;;  %v2051_v6 = vld [vmem:[%s2177_s22] sm:$0xff]   ;;  %v2053_v7 = vld [vmem:[%s2177_s22 + $0x10] sm:$0xff]  }
  0x13   : > { %1853 = vmatprep.mubr.msk.bf16.mxu1 %vm337_vm1, %v2050_v5  ;;  %1887 = vmatprep.mubr.msk.bf16.mxu0 %vm337_vm1, %v2051_v6  ;;  %v2054_v8 = vld [vmem:[%s2177_s22 + $0x8] sm:$0xff]   ;;  %v2055_v10 = vld [vmem:[%s2177_s22 + $0x18] sm:$0xff]   ;;  %v2056_v11 = vld [vmem:[%s2177_s22 + $0x10] sm:$0xff]  }
  0x14   : > { %1854 = vmatmul.mubr.msk.bf16.vlgmr.msra.gmra.mrb[0].mxu1 %vm337_vm1, %v2053_v7  ;;  %1888 = vmatmul.mubr.msk.bf16.vlgmr.msra.gmra.mrb[0].mxu0 %vm337_vm1, %v2054_v8  ;;  %v2057_v12 = vld [vmem:[%s2177_s22 + $0x20] sm:$0xff]   ;;  %v2058_v13 = vld [vmem:[%s2177_s22 + $0x18] sm:$0xff]   ;;  %v2059_v14 = vld [vmem:[%s2177_s22 + $0x28] sm:$0xff]  }
  0x15   : > { %1954 = vmatpush3.bf16.msra.mxu1 %v685_v4  ;;  %1920 = vmatpush3.bf16.msra.mxu0 %v1018_v9  ;;  %v2060_v15 = vld [vmem:[%s2177_s22 + $0x20] sm:$0xff]   ;;  %v2061_v16 = vld [vmem:[%s2177_s22 + $0x30] sm:$0xff]   ;;  %v2062_v17 = vld [vmem:[%s2177_s22 + $0x28] sm:$0xff]  }
  0x16   : > { %1857 = vmatprep.mubr.msk.bf16.mxu1 %vm337_vm1, %v2055_v10  ;;  %1891 = vmatprep.mubr.msk.bf16.mxu0 %vm337_vm1, %v2056_v11  ;;  %v2063_v18 = vld [vmem:[%s2177_s22 + $0x38] sm:$0xff]   ;;  %v2064_v19 = vld [vmem:[%s2177_s22 + $0x30] sm:$0xff]   ;;  %v2065_v20 = vld [vmem:[%s2177_s22 + $0x40] sm:$0xff]  }
  0x17   : > { %v2066_v21 = vld [vmem:[%s2177_s22 + $0x38] sm:$0xff]   ;;  %v2067_v22 = vld [vmem:[%s2177_s22 + $0x48] sm:$0xff]   ;;  %v2068_v23 = vld [vmem:[%s2177_s22 + $0x10] sm:$0xff]  }
  0x18   : > { %v2069_v24 = vld [vmem:[%s2177_s22 + $0x50] sm:$0xff]   ;;  %v2070_v25 = vld [vmem:[%s2177_s22 + $0x18] sm:$0xff]   ;;  %v2072_v27 = vld [vmem:[%s2177_s22 + $0x20] sm:$0xff]  }
  0x19   : > { %v2071_v26 = vld [vmem:[%s2177_s22 + $0x58] sm:$0xff]   ;;  %v2073_v28 = vld [vmem:[%s2177_s22 + $0x60] sm:$0xff]   ;;  %v2074_v29 = vld [vmem:[%s2177_s22 + $0x28] sm:$0xff]  }
  0x1a   : > { %v2075_v30 = vld [vmem:[%s2177_s22 + $0x68] sm:$0xff]   ;;  %v2076_v31 = vld [vmem:[%s2177_s22 + $0x30] sm:$0xff]   ;;  %v2078_v33 = vld [vmem:[%s2177_s22 + $0x38] sm:$0xff]  }
  0x1b   : > { %v2077_v32 = vld [vmem:[%s2177_s22 + $0x70] sm:$0xff]   ;;  %v2079_v34 = vld [vmem:[%s2177_s22 + $0x78] sm:$0xff]   ;;  %v2080_v35 = vld [vmem:[%s2177_s22 + $0x40] sm:$0xff]  }
  0x1c   : > { %1858 = vmatmul.mubr.msk.bf16.gmra.mrb[4].mxu1 %vm337_vm1, %v2057_v12  ;;  %1892 = vmatmul.mubr.msk.bf16.gmra.mrb[4].mxu0 %vm337_vm1, %v2058_v13  ;;  %v2081_v36 = vld [vmem:[%s2177_s22 + $0x80] sm:$0xff]   ;;  %v2082_v37 = vld [vmem:[%s2177_s22 + $0x48] sm:$0xff]   ;;  %v2084_v39 = vld [vmem:[%s2177_s22 + $0x50] sm:$0xff]  }
  0x1d   : > { %1861 = vmatprep.mubr.msk.bf16.mxu1 %vm337_vm1, %v2059_v14  ;;  %1895 = vmatprep.mubr.msk.bf16.mxu0 %vm337_vm1, %v2060_v15  ;;  %v2083_v38 = vld [vmem:[%s2177_s22 + $0x40] sm:$0xff]   ;;  %v2085_v40 = vld [vmem:[%s2177_s22 + $0x48] sm:$0xff]   ;;  %v2086_v41 = vld [vmem:[%s2177_s22 + $0x58] sm:$0xff]  }
  0x1e   : > { %v2087_v42 = vld [vmem:[%s2177_s22 + $0x50] sm:$0xff]   ;;  %v2088_v43 = vld [vmem:[%s2177_s22 + $0x60] sm:$0xff]   ;;  %v2089_v44 = vld [vmem:[%s2177_s22 + $0x58] sm:$0xff]  }
  0x1f   : > { %v2090_v45 = vld [vmem:[%s2177_s22 + $0x68] sm:$0xff]   ;;  %v2091_v46 = vld [vmem:[%s2177_s22 + $0x60] sm:$0xff]   ;;  %v2092_v47 = vld [vmem:[%s2177_s22 + $0x70] sm:$0xff]  }
  0x20   : > { %v2093_v48 = vld [vmem:[%s2177_s22 + $0x68] sm:$0xff]   ;;  %v2094_v49 = vld [vmem:[%s2177_s22 + $0x78] sm:$0xff]   ;;  %v2095_v50 = vld [vmem:[%s2177_s22 + $0x70] sm:$0xff]  }
  0x21   : > { %v2096_v51 = vld [vmem:[%s2177_s22 + $0x80] sm:$0xff]   ;;  %v2097_v52 = vld [vmem:[%s2177_s22 + $0x78] sm:$0xff]   ;;  %v2098_v53 = vld [vmem:[%s2177_s22 + $0x88] sm:$0xff]  }
  0x24   : > { %1862 = vmatmul.mubr.msk.bf16.gmra.mrb[8].mxu1 %vm337_vm1, %v2061_v16  ;;  %1896 = vmatmul.mubr.msk.bf16.gmra.mrb[8].mxu0 %vm337_vm1, %v2062_v17 }
  0x25   : > { %1865 = vmatprep.mubr.msk.bf16.mxu1 %vm337_vm1, %v2063_v18  ;;  %1899 = vmatprep.mubr.msk.bf16.mxu0 %vm337_vm1, %v2064_v19 }
  0x2c   : > { %1866 = vmatmul.mubr.msk.bf16.gmra.mrb[12].mxu1 %vm337_vm1, %v2065_v20  ;;  %1900 = vmatmul.mubr.msk.bf16.gmra.mrb[12].mxu0 %vm337_vm1, %v2066_v21 }
  0x2d   : > { %1869 = vmatprep.mubr.msk.bf16.mxu1 %vm337_vm1, %v2067_v22  ;;  %1921 = vmatprep.mubr.msk.bf16.mxu0 %vm337_vm1, %v2068_v23 }
  0x34   : > { %1870 = vmatmul.mubr.msk.bf16.gmra.mrb[16].mxu1 %vm337_vm1, %v2069_v24  ;;  %1922 = vmatmul.mubr.msk.bf16.vlgmr.msra.gmra.mrb[0].mxu0 %vm337_vm1, %v2070_v25 }
  0x35   : > { %1873 = vmatprep.mubr.msk.bf16.mxu1 %vm337_vm1, %v2071_v26  ;;  %1925 = vmatprep.mubr.msk.bf16.mxu0 %vm337_vm1, %v2072_v27 }
  0x3c   : > { %1874 = vmatmul.mubr.msk.bf16.gmra.mrb[20].mxu1 %vm337_vm1, %v2073_v28  ;;  %1926 = vmatmul.mubr.msk.bf16.gmra.mrb[4].mxu0 %vm337_vm1, %v2074_v29 }
  0x3d   : > { %1877 = vmatprep.mubr.msk.bf16.mxu1 %vm337_vm1, %v2075_v30  ;;  %1929 = vmatprep.mubr.msk.bf16.mxu0 %vm337_vm1, %v2076_v31 }
  0x44   : > { %1878 = vmatmul.mubr.msk.bf16.gmra.mrb[24].mxu1 %vm337_vm1, %v2077_v32  ;;  %1930 = vmatmul.mubr.msk.bf16.gmra.mrb[8].mxu0 %vm337_vm1, %v2078_v33 }
  0x45   : > { %1881 = vmatprep.mubr.msk.bf16.mxu1 %vm337_vm1, %v2079_v34  ;;  %1933 = vmatprep.mubr.msk.bf16.mxu0 %vm337_vm1, %v2080_v35 }
  0x4c   : > { %1882 = vmatmul.mubr.msk.bf16.gmra.mrb[28].mxu1 %vm337_vm1, %v2081_v36  ;;  %1934 = vmatmul.mubr.msk.bf16.gmra.mrb[12].mxu0 %vm337_vm1, %v2082_v37 }
  0x4d   : > { %1903 = vmatprep.mubr.msk.bf16.mxu1 %vm337_vm1, %v2083_v38  ;;  %1937 = vmatprep.mubr.msk.bf16.mxu0 %vm337_vm1, %v2084_v39 }
  0x54   : > { %1904 = vmatmul.mubr.msk.bf16.vlgmr.msra.gmra.mrb[16].mxu1 %vm337_vm1, %v2085_v40  ;;  %1938 = vmatmul.mubr.msk.bf16.gmra.mrb[16].mxu0 %vm337_vm1, %v2086_v41 }
  0x55   : > { %1907 = vmatprep.mubr.msk.bf16.mxu1 %vm337_vm1, %v2087_v42  ;;  %1941 = vmatprep.mubr.msk.bf16.mxu0 %vm337_vm1, %v2088_v43 }
  0x5c   : > { %1908 = vmatmul.mubr.msk.bf16.gmra.mrb[20].mxu1 %vm337_vm1, %v2089_v44  ;;  %1942 = vmatmul.mubr.msk.bf16.gmra.mrb[20].mxu0 %vm337_vm1, %v2090_v45 }
  0x5d   : > { %1911 = vmatprep.mubr.msk.bf16.mxu1 %vm337_vm1, %v2091_v46  ;;  %1945 = vmatprep.mubr.msk.bf16.mxu0 %vm337_vm1, %v2092_v47 }
  0x64   : > { %1912 = vmatmul.mubr.msk.bf16.gmra.mrb[24].mxu1 %vm337_vm1, %v2093_v48  ;;  %1946 = vmatmul.mubr.msk.bf16.gmra.mrb[24].mxu0 %vm337_vm1, %v2094_v49 }
  0x65   : > { %1915 = vmatprep.mubr.msk.bf16.mxu1 %vm337_vm1, %v2095_v50  ;;  %1949 = vmatprep.mubr.msk.bf16.mxu0 %vm337_vm1, %v2096_v51 }
  0x6c   : > { %1916 = vmatmul.mubr.msk.bf16.gmra.mrb[28].mxu1 %vm337_vm1, %v2097_v52  ;;  %1950 = vmatmul.mubr.msk.bf16.gmra.mrb[28].mxu0 %vm337_vm1, %v2098_v53 }
  0xe7   : > { %v1855_v54 = vpop.f32.mrb[0].mxu1 }
  0xe8   : > { %v424_v55 = vpop.f32.mrb[1].mxu1 }
  0xe9   : > { %v1856_v56 = vpop.f32.mrb[2].mxu1 }
  0xea   : > { %v427_v57 = vpop.f32.mrb[3].mxu1 }
  0xef   : > { %v1859_v58 = vpop.f32.mrb[4].mxu1 }
  0xf0   : > { %v440_v59 = vpop.f32.mrb[5].mxu1 }
  0xf1   : > { %v1860_v60 = vpop.f32.mrb[6].mxu1 }
  0xf2   : > { %v443_v61 = vpop.f32.mrb[7].mxu1 }
  0xf7   : > { %v1863_v62 = vpop.f32.mrb[8].mxu1 }
  0xf8   : > { %v456_v63 = vpop.f32.mrb[9].mxu1 }
  0xf9   : > { %v1864_v0 = vpop.f32.mrb[10].mxu1 }
  0xfa   : > { %v459_v1 = vpop.f32.mrb[11].mxu1 }
  0xff   : > { %v1867_v2 = vpop.f32.mrb[12].mxu1 }
 0x100   : > { %v472_v3 = vpop.f32.mrb[13].mxu1 }
 0x101   : > { %v1868_v4 = vpop.f32.mrb[14].mxu1 }
 0x102   : > { %v475_v5 = vpop.f32.mrb[15].mxu1 }
 0x107   : > { %v1923_v6 = vpop.f32.mrb[0].mxu0 }
 0x108   : > { %v1955_v7 = vadd.f32 %v1923_v6, %v1855_v54  ;;  %v1054_v8 = vpop.f32.mrb[1].mxu0 }
 0x109   : > { %v1956_v9 = vadd.f32 %v1054_v8, %v424_v55  ;;  %v1924_v10 = vpop.f32.mrb[2].mxu0 }
 0x10a   : > { %v1957_v11 = vadd.f32 %v1924_v10, %v1856_v56  ;;  %v1057_v12 = vpop.f32.mrb[3].mxu0 }
 0x10b   : > { %v1958_v13 = vadd.f32 %v1057_v12, %v427_v57 }
 0x10c   : > { %v1713_v14 = vpack.c.bf16 %v1957_v11, %v1955_v7 }
 0x10d   : > { %v1708_v15 = vpack.c.bf16 %v1958_v13, %v1956_v9 }
 0x10e   : > { %1785 = vst [vmem:[%s2280_s26 + $0x8] sm:$0xff] %v1713_v14  }
 0x10f   : > { %1709 = vst [vmem:[%s2280_s26] sm:$0xff] %v1708_v15   ;;  %v1927_v16 = vpop.f32.mrb[4].mxu0 }
 0x110   : > { %v1959_v17 = vadd.f32 %v1927_v16, %v1859_v58  ;;  %v1070_v18 = vpop.f32.mrb[5].mxu0 }
 0x111   : > { %v1960_v19 = vadd.f32 %v1070_v18, %v440_v59  ;;  %v1928_v20 = vpop.f32.mrb[6].mxu0 }
 0x112   : > { %v1961_v21 = vadd.f32 %v1928_v20, %v1860_v60  ;;  %v1073_v22 = vpop.f32.mrb[7].mxu0 }
 0x113   : > { %v1962_v23 = vadd.f32 %v1073_v22, %v443_v61 }
 0x114   : > { %v1723_v24 = vpack.c.bf16 %v1961_v21, %v1959_v17 }
 0x115   : > { %v1718_v25 = vpack.c.bf16 %v1962_v23, %v1960_v19 }
 0x116   : > { %1787 = vst [vmem:[%s2280_s26 + $0x18] sm:$0xff] %v1723_v24  }
 0x117   : > { %1786 = vst [vmem:[%s2280_s26 + $0x10] sm:$0xff] %v1718_v25   ;;  %v1931_v26 = vpop.f32.mrb[8].mxu0 }
 0x118   : > { %v1963_v27 = vadd.f32 %v1931_v26, %v1863_v62  ;;  %v1086_v28 = vpop.f32.mrb[9].mxu0 }
 0x119   : > { %v1964_v29 = vadd.f32 %v1086_v28, %v456_v63  ;;  %v1932_v30 = vpop.f32.mrb[10].mxu0 }
 0x11a   : > { %v1965_v31 = vadd.f32 %v1932_v30, %v1864_v0  ;;  %v1089_v32 = vpop.f32.mrb[11].mxu0 }
 0x11b   : > { %v1966_v33 = vadd.f32 %v1089_v32, %v459_v1 }
 0x11c   : > { %v1733_v34 = vpack.c.bf16 %v1965_v31, %v1963_v27 }
 0x11d   : > { %v1728_v35 = vpack.c.bf16 %v1966_v33, %v1964_v29 }
 0x11e   : > { %1789 = vst [vmem:[%s2280_s26 + $0x28] sm:$0xff] %v1733_v34  }
 0x11f   : > { %1788 = vst [vmem:[%s2280_s26 + $0x20] sm:$0xff] %v1728_v35   ;;  %v1935_v36 = vpop.f32.mrb[12].mxu0 }
 0x120   : > { %v1967_v37 = vadd.f32 %v1935_v36, %v1867_v2  ;;  %v1102_v38 = vpop.f32.mrb[13].mxu0 }
 0x121   : > { %v1968_v39 = vadd.f32 %v1102_v38, %v472_v3  ;;  %v1936_v40 = vpop.f32.mrb[14].mxu0 }
 0x122   : > { %v1969_v41 = vadd.f32 %v1936_v40, %v1868_v4  ;;  %v1105_v42 = vpop.f32.mrb[15].mxu0 }
 0x123   : > { %v1970_v43 = vadd.f32 %v1105_v42, %v475_v5 }
 0x124   : > { %v1743_v44 = vpack.c.bf16 %v1969_v41, %v1967_v37 }
 0x125   : > { %v1738_v45 = vpack.c.bf16 %v1970_v43, %v1968_v39 }
 0x126   : > { %1791 = vst [vmem:[%s2280_s26 + $0x38] sm:$0xff] %v1743_v44  }
 0x127   : > { %v1905_v46 = vpop.f32.mrb[16].mxu1  ;;  %1790 = vst [vmem:[%s2280_s26 + $0x30] sm:$0xff] %v1738_v45   ;;  %v1939_v47 = vpop.f32.mrb[16].mxu0 }
 0x128   : > { %v785_v48 = vpop.f32.mrb[17].mxu1  ;;  %v1971_v49 = vadd.f32 %v1939_v47, %v1905_v46  ;;  %v1118_v50 = vpop.f32.mrb[17].mxu0 }
 0x129   : > { %v1906_v51 = vpop.f32.mrb[18].mxu1  ;;  %v1972_v52 = vadd.f32 %v1118_v50, %v785_v48  ;;  %v1940_v53 = vpop.f32.mrb[18].mxu0 }
 0x12a   : > { %v788_v54 = vpop.f32.mrb[19].mxu1  ;;  %v1973_v55 = vadd.f32 %v1940_v53, %v1906_v51  ;;  %v1121_v56 = vpop.f32.mrb[19].mxu0 }
 0x12b   : > { %v1974_v57 = vadd.f32 %v1121_v56, %v788_v54 }
 0x12c   : > { %v1753_v58 = vpack.c.bf16 %v1973_v55, %v1971_v49 }
 0x12d   : > { %v1748_v59 = vpack.c.bf16 %v1974_v57, %v1972_v52 }
 0x12e   : > { %1793 = vst [vmem:[%s2280_s26 + $0x48] sm:$0xff] %v1753_v58  }
 0x12f   : > { %v1909_v60 = vpop.f32.mrb[20].mxu1  ;;  %1792 = vst [vmem:[%s2280_s26 + $0x40] sm:$0xff] %v1748_v59   ;;  %v1943_v61 = vpop.f32.mrb[20].mxu0 }
 0x130   : > { %v801_v62 = vpop.f32.mrb[21].mxu1  ;;  %v1975_v63 = vadd.f32 %v1943_v61, %v1909_v60  ;;  %v1134_v0 = vpop.f32.mrb[21].mxu0 }
 0x131   : > { %v1910_v1 = vpop.f32.mrb[22].mxu1  ;;  %v1976_v2 = vadd.f32 %v1134_v0, %v801_v62  ;;  %v1944_v3 = vpop.f32.mrb[22].mxu0 }
 0x132   : > { %v804_v4 = vpop.f32.mrb[23].mxu1  ;;  %v1977_v5 = vadd.f32 %v1944_v3, %v1910_v1  ;;  %v1137_v6 = vpop.f32.mrb[23].mxu0 }
 0x133   : > { %v1978_v7 = vadd.f32 %v1137_v6, %v804_v4 }
 0x134   : > { %v1763_v8 = vpack.c.bf16 %v1977_v5, %v1975_v63 }
 0x135   : > { %v1758_v9 = vpack.c.bf16 %v1978_v7, %v1976_v2 }
 0x136   : > { %1795 = vst [vmem:[%s2280_s26 + $0x58] sm:$0xff] %v1763_v8  }
 0x137   : > { %v1913_v10 = vpop.f32.mrb[24].mxu1  ;;  %1794 = vst [vmem:[%s2280_s26 + $0x50] sm:$0xff] %v1758_v9   ;;  %v1947_v11 = vpop.f32.mrb[24].mxu0 }
 0x138   : > { %v817_v12 = vpop.f32.mrb[25].mxu1  ;;  %v1979_v13 = vadd.f32 %v1947_v11, %v1913_v10  ;;  %v1150_v14 = vpop.f32.mrb[25].mxu0 }
 0x139   : > { %v1914_v15 = vpop.f32.mrb[26].mxu1  ;;  %v1980_v16 = vadd.f32 %v1150_v14, %v817_v12  ;;  %v1948_v17 = vpop.f32.mrb[26].mxu0 }
 0x13a   : > { %v820_v18 = vpop.f32.mrb[27].mxu1  ;;  %v1981_v19 = vadd.f32 %v1948_v17, %v1914_v15  ;;  %v1153_v20 = vpop.f32.mrb[27].mxu0 }
 0x13b   : > { %v1982_v21 = vadd.f32 %v1153_v20, %v820_v18 }
 0x13c   : > { %v1773_v22 = vpack.c.bf16 %v1981_v19, %v1979_v13 }
 0x13d   : > { %v1768_v23 = vpack.c.bf16 %v1982_v21, %v1980_v16 }
 0x13e   : > { %1797 = vst [vmem:[%s2280_s26 + $0x68] sm:$0xff] %v1773_v22  }
 0x13f   : > { %v1917_v24 = vpop.f32.mrb[28].mxu1  ;;  %1796 = vst [vmem:[%s2280_s26 + $0x60] sm:$0xff] %v1768_v23   ;;  %v1951_v25 = vpop.f32.mrb[28].mxu0 }
 0x140   : > { %v833_v26 = vpop.f32.mrb[29].mxu1  ;;  %v1983_v27 = vadd.f32 %v1951_v25, %v1917_v24  ;;  %v1166_v28 = vpop.f32.mrb[29].mxu0 }
 0x141   : > { %v1918_v29 = vpop.f32.mrb[30].mxu1  ;;  %v1984_v30 = vadd.f32 %v1166_v28, %v833_v26  ;;  %v1952_v31 = vpop.f32.mrb[30].mxu0 }
 0x142   : > { %v836_v32 = vpop.f32.mrb[31].mxu1  ;;  %v1985_v33 = vadd.f32 %v1952_v31, %v1918_v29  ;;  %v1169_v34 = vpop.f32.mrb[31].mxu0 }
 0x143   : > { %v1986_v35 = vadd.f32 %v1169_v34, %v836_v32 }
 0x144   : > { %v1783_v36 = vpack.c.bf16 %v1985_v33, %v1983_v27 }
 0x145   : > { %v1778_v37 = vpack.c.bf16 %v1986_v35, %v1984_v30 }
 0x146   : > { %1799 = vst [vmem:[%s2280_s26 + $0x78] sm:$0xff] %v1783_v36  }
 0x147   : > { %1798 = vst [vmem:[%s2280_s26 + $0x70] sm:$0xff] %v1778_v37  }
 0x148 PF: > { %s12_s11 = sadd.s32 1, %s2121_s11   ;;  %s2310_s9 = smov %s2117_s10 }
 0x149   : > { %p9_p5 = scmp.ge.s32.totalorder %s12_s11, 4   ;;  %s2311_s10 = smov %s2313_s12 }
 0x14b   :  { %11 = sbr.rel (!%p9_p5) target bundleno = 2 (0x2), region = 62 }

</bundles_post_ra>
